<compile_context>
chip_gen: v6e
topology: v6e:2x2x1
jax: 0.10.0
libtpu: 0.0.40
codegen_flags: <defaults>
</compile_context>

<pallas_src>
import jax
import jax.numpy as jnp
from jax.experimental import pallas as pl
from jax.experimental.pallas import tpu as pltpu

LANE = 128      # vreg lane width
SUBLANE = 8     # vreg sublane count
IN_ALIGN = 16   # bf16 sublane-packing alignment for the contraction (K) dim


def _round_up(n, m):
    return ((n + m - 1) // m) * m


def _pad2(a, rows, cols):
    return jnp.pad(a, ((0, rows - a.shape[0]), (0, cols - a.shape[1])))


def _mlp_kernel(x_ref, w1_ref, b1_ref, w2_ref, b2_ref, w3_ref, b3_ref, o_ref):
    # Layer 1: bf16 MXU matmul (K padded to 64), f32 accumulate; bias + ReLU on VPU.
    h1 = jnp.dot(x_ref[...], w1_ref[...], preferred_element_type=jnp.float32)
    h1 = jnp.maximum(h1 + b1_ref[...], 0.0)
    # (dropout: identity in eval mode)
    # Layer 2
    h2 = jnp.dot(h1.astype(jnp.bfloat16), w2_ref[...],
                 preferred_element_type=jnp.float32)
    h2 = jnp.maximum(h2 + b2_ref[...], 0.0)
    # (dropout: identity in eval mode)
    # Layer 3: logits (only 8 padded output columns), no activation.
    out = jnp.dot(h2.astype(jnp.bfloat16), w3_ref[...],
                  preferred_element_type=jnp.float32)
    o_ref[...] = (out + b3_ref[...]).astype(o_ref.dtype)


def prepare_params(params):
    """One-time prep: zero-pad dims, weights -> bf16, biases -> f32.

    Padding is zero, so padded lanes of h1/h2 are ReLU(0 + 0) = 0 and the padded
    rows of w2/w3 are zero => the extra lanes contribute exactly 0 downstream.
    Call this ONCE and reuse the result; it is hoisted out of the forward path.
    """
    w1, b1 = params["w1"], params["b1"]
    w2, b2 = params["w2"], params["b2"]
    w3, b3 = params["w3"], params["b3"]
    in_p = _round_up(w1.shape[0], IN_ALIGN)    # 50  -> 64  (not 128: halves x bytes)
    hid_p = _round_up(w1.shape[1], LANE)       # 100 -> 128 (lane-dense MXU tiles)
    cls_p = _round_up(w3.shape[1], SUBLANE)    # 5   -> 8   (16x less output traffic)
    return {
        "w1": _pad2(w1, in_p, hid_p).astype(jnp.bfloat16),
        "b1": _pad2(b1, 1, hid_p).astype(jnp.float32),
        "w2": _pad2(w2, hid_p, hid_p).astype(jnp.bfloat16),
        "b2": _pad2(b2, 1, hid_p).astype(jnp.float32),
        "w3": _pad2(w3, hid_p, cls_p).astype(jnp.bfloat16),
        "b3": _pad2(b3, 1, cls_p).astype(jnp.float32),
    }


def _choose_batch_tiling(B, tile_b_max=2048, min_steps=2):
    """Pick (tile_b, b_pad, n_steps): big tiles to amortize per-step overhead,
    >= min_steps steps when the batch splits (v7x megacore), minimal batch pad."""
    b_aligned = _round_up(max(B, 1), SUBLANE)
    n_steps = max(min_steps, pl.cdiv(b_aligned, tile_b_max))
    tile_b = min(_round_up(pl.cdiv(b_aligned, n_steps), SUBLANE), tile_b_max)
    n_steps = pl.cdiv(b_aligned, tile_b)     # drop steps that would be all padding
    b_pad = tile_b * n_steps
    return tile_b, b_pad, n_steps


def passenger_behavior_forward(x, prepared, *, num_classes, tile_b_max=2048):
    """Fused forward pass of PassengerBehaviorModel.

    x: [B, input_size] float32
    prepared: output of prepare_params() (padded bf16 weights / f32 biases,
              nn.Linear weights pre-transposed to [in, out]).
    returns: [B, num_classes] float32 logits
    """
    B, in_features = x.shape
    in_p, hid_p = prepared["w1"].shape
    cls_p = prepared["w3"].shape[1]
    assert in_features <= in_p

    tile_b, b_pad, n_steps = _choose_batch_tiling(B, tile_b_max=tile_b_max)

    # Single fused pad: batch -> b_pad rows, features -> in_p lanes, cast to bf16.
    xp = jnp.pad(x.astype(jnp.bfloat16),
                 ((0, b_pad - B), (0, in_p - in_features)))

    # Constant index_map => weights/biases stay VMEM-resident (DMA'd on step 0 only).
    resident = lambda shape: pl.BlockSpec(shape, lambda i: (0, 0))

    out_padded = pl.pallas_call(
        _mlp_kernel,
        out_shape=jax.ShapeDtypeStruct((b_pad, cls_p), jnp.float32),
        grid=(n_steps,),
        in_specs=[
            pl.BlockSpec((tile_b, in_p), lambda i: (i, 0)),   # x: tiled over batch
            resident(prepared["w1"].shape), resident(prepared["b1"].shape),
            resident(prepared["w2"].shape), resident(prepared["b2"].shape),
            resident(prepared["w3"].shape), resident(prepared["b3"].shape),
        ],
        out_specs=pl.BlockSpec((tile_b, cls_p), lambda i: (i, 0)),
        compiler_params=pltpu.CompilerParams(
            dimension_semantics=("parallel",),        # shard batch over TCs (v7x)
            vmem_limit_bytes=32 * 1024 * 1024,        # safe on v7x's 64 MiB VMEM
        ),
    )(xp, prepared["w1"], prepared["b1"], prepared["w2"], prepared["b2"],
      prepared["w3"], prepared["b3"])

    return out_padded[:B, :num_classes]


def init_params(key, input_size=50, hidden_size=100, num_classes=5):
    """Deterministic init matching the PyTorch module's parameter shapes.

    nn.Linear(in, out) has weight [out, in]; we store its transpose [in, out]
    so the kernel computes x @ W directly (uniform(-1/sqrt(in), 1/sqrt(in)) init).
    """
    ks = jax.random.split(key, 6)

    def linear(kw, kb, fan_in, fan_out):
        bound = 1.0 / jnp.sqrt(jnp.float32(fan_in))
        w = jax.random.uniform(kw, (fan_in, fan_out), jnp.float32, -bound, bound)
        b = jax.random.uniform(kb, (1, fan_out), jnp.float32, -bound, bound)
        return w, b

    w1, b1 = linear(ks[0], ks[1], input_size, hidden_size)
    w2, b2 = linear(ks[2], ks[3], hidden_size, hidden_size)
    w3, b3 = linear(ks[4], ks[5], hidden_size, num_classes)
    return {"w1": w1, "b1": b1, "w2": w2, "b2": b2, "w3": w3, "b3": b3}


def reference_forward_f32(x, p):
    """Original module semantics, full f32 (dropout = identity in eval mode)."""
    h1 = jnp.maximum(x @ p["w1"] + p["b1"], 0.0)
    h2 = jnp.maximum(h1 @ p["w2"] + p["b2"], 0.0)
    return h2 @ p["w3"] + p["b3"]


def reference_forward_bf16(x, p):
    """Mirrors the kernel numerics: bf16 operands, f32 accumulation + epilogue."""
    w1 = p["w1"].astype(jnp.bfloat16)
    w2 = p["w2"].astype(jnp.bfloat16)
    w3 = p["w3"].astype(jnp.bfloat16)
    h1 = jnp.dot(x.astype(jnp.bfloat16), w1, preferred_element_type=jnp.float32)
    h1 = jnp.maximum(h1 + p["b1"], 0.0)
    h2 = jnp.dot(h1.astype(jnp.bfloat16), w2, preferred_element_type=jnp.float32)
    h2 = jnp.maximum(h2 + p["b2"], 0.0)
    out = jnp.dot(h2.astype(jnp.bfloat16), w3, preferred_element_type=jnp.float32)
    return out + p["b3"]


if __name__ == "__main__":
    key = jax.random.PRNGKey(0)
    k_params, k_x1, k_x2 = jax.random.split(key, 3)

    INPUT_SIZE, HIDDEN_SIZE, NUM_CLASSES = 50, 100, 5

    params = init_params(k_params, INPUT_SIZE, HIDDEN_SIZE, NUM_CLASSES)
    prepared = prepare_params(params)   # hoisted out of the per-call path; done once

    fwd = jax.jit(passenger_behavior_forward,
                  static_argnames=("num_classes", "tile_b_max"))

    # batch=8: single-step grid; batch=19: odd batch -> 2-step grid + batch padding.
    for k_x, batch in ((k_x1, 8), (k_x2, 19)):
        x = jax.random.normal(k_x, (batch, INPUT_SIZE), jnp.float32)
        out = jax.block_until_ready(fwd(x, prepared, num_classes=NUM_CLASSES))
        assert out.shape == (batch, NUM_CLASSES), out.shape

        # Tight check against a pure-JAX path with identical bf16/f32 numerics.
        ref_bf16 = reference_forward_bf16(x, params)
        assert jnp.allclose(out, ref_bf16, atol=2e-3, rtol=2e-3), \
            "mismatch vs bf16 reference"

        # Loose check against full-f32 module semantics (bf16 quantization error only).
        ref_f32 = reference_forward_f32(x, params)
        assert jnp.max(jnp.abs(out - ref_f32)) < 0.1, "mismatch vs f32 reference"

    print("KERNEL_OK")
</pallas_src>

<mosaic_0001>
module attributes {stable_mosaic.version = 11 : i64} {
  func.func @_mlp_kernel(%arg0: i32, %arg1: memref<8x64xbf16, #tpu.memory_space<vmem>>, %arg2: memref<64x128xbf16, #tpu.memory_space<vmem>>, %arg3: memref<1x128xf32, #tpu.memory_space<vmem>>, %arg4: memref<128x128xbf16, #tpu.memory_space<vmem>>, %arg5: memref<1x128xf32, #tpu.memory_space<vmem>>, %arg6: memref<128x8xbf16, #tpu.memory_space<vmem>>, %arg7: memref<1x8xf32, #tpu.memory_space<vmem>>, %arg8: memref<8x8xf32, #tpu.memory_space<vmem>>) attributes {dimension_semantics = [#tpu.dimension_semantics<parallel>], iteration_bounds = array<i64: 1>, scalar_prefetch = 0 : i64, scratch_operands = 0 : i64, tpu.core_type = #tpu.core_type<tc>, window_params = [{transform_indices = @transform_0, window_bounds = array<i64: 8, 64>}, {pipeline_mode = #tpu.pipeline_mode<synchronous>, transform_indices = @transform_1, window_bounds = array<i64: 64, 128>}, {pipeline_mode = #tpu.pipeline_mode<synchronous>, transform_indices = @transform_2, window_bounds = array<i64: 1, 128>}, {pipeline_mode = #tpu.pipeline_mode<synchronous>, transform_indices = @transform_3, window_bounds = array<i64: 128, 128>}, {pipeline_mode = #tpu.pipeline_mode<synchronous>, transform_indices = @transform_4, window_bounds = array<i64: 1, 128>}, {pipeline_mode = #tpu.pipeline_mode<synchronous>, transform_indices = @transform_5, window_bounds = array<i64: 128, 8>}, {pipeline_mode = #tpu.pipeline_mode<synchronous>, transform_indices = @transform_6, window_bounds = array<i64: 1, 8>}, {transform_indices = @transform_7, window_bounds = array<i64: 8, 8>}]} {
    %c0 = arith.constant 0 : index
    %c0_0 = arith.constant 0 : index
    %0 = vector.load %arg1[%c0, %c0_0] : memref<8x64xbf16, #tpu.memory_space<vmem>>, vector<8x64xbf16>
    %c0_1 = arith.constant 0 : index
    %c0_2 = arith.constant 0 : index
    %1 = vector.load %arg2[%c0_1, %c0_2] : memref<64x128xbf16, #tpu.memory_space<vmem>>, vector<64x128xbf16>
    %cst = arith.constant dense<0.000000e+00> : vector<8x128xf32>
    %2 = tpu.matmul %0, %1, %cst {dimension_numbers = #tpu.dot_dimension_numbers<[1], [0], [0], [1], [0, 0, 1, 1], [], []>} : vector<8x64xbf16>, vector<64x128xbf16>, vector<8x128xf32> -> vector<8x128xf32>
    %c0_3 = arith.constant 0 : index
    %c0_4 = arith.constant 0 : index
    %3 = vector.load %arg3[%c0_3, %c0_4] : memref<1x128xf32, #tpu.memory_space<vmem>>, vector<1x128xf32>
    %4 = vector.broadcast %3 : vector<1x128xf32> to vector<8x128xf32>
    %5 = arith.addf %2, %4 : vector<8x128xf32>
    %cst_5 = arith.constant 0.000000e+00 : f32
    %6 = vector.broadcast %cst_5 : f32 to vector<8x128xf32>
    %7 = arith.maximumf %5, %6 : vector<8x128xf32>
    %8 = arith.truncf %7 : vector<8x128xf32> to vector<8x128xbf16>
    %c0_6 = arith.constant 0 : index
    %c0_7 = arith.constant 0 : index
    %9 = vector.load %arg4[%c0_6, %c0_7] : memref<128x128xbf16, #tpu.memory_space<vmem>>, vector<128x128xbf16>
    %cst_8 = arith.constant dense<0.000000e+00> : vector<8x128xf32>
    %10 = tpu.matmul %8, %9, %cst_8 {dimension_numbers = #tpu.dot_dimension_numbers<[1], [0], [0], [1], [0, 0, 1, 1], [], []>} : vector<8x128xbf16>, vector<128x128xbf16>, vector<8x128xf32> -> vector<8x128xf32>
    %c0_9 = arith.constant 0 : index
    %c0_10 = arith.constant 0 : index
    %11 = vector.load %arg5[%c0_9, %c0_10] : memref<1x128xf32, #tpu.memory_space<vmem>>, vector<1x128xf32>
    %12 = vector.broadcast %11 : vector<1x128xf32> to vector<8x128xf32>
    %13 = arith.addf %10, %12 : vector<8x128xf32>
    %cst_11 = arith.constant 0.000000e+00 : f32
    %14 = vector.broadcast %cst_11 : f32 to vector<8x128xf32>
    %15 = arith.maximumf %13, %14 : vector<8x128xf32>
    %16 = arith.truncf %15 : vector<8x128xf32> to vector<8x128xbf16>
    %c0_12 = arith.constant 0 : index
    %c0_13 = arith.constant 0 : index
    %17 = vector.load %arg6[%c0_12, %c0_13] : memref<128x8xbf16, #tpu.memory_space<vmem>>, vector<128x8xbf16>
    %cst_14 = arith.constant dense<0.000000e+00> : vector<8x8xf32>
    %18 = tpu.matmul %16, %17, %cst_14 {dimension_numbers = #tpu.dot_dimension_numbers<[1], [0], [0], [1], [0, 0, 1, 1], [], []>} : vector<8x128xbf16>, vector<128x8xbf16>, vector<8x8xf32> -> vector<8x8xf32>
    %c0_15 = arith.constant 0 : index
    %c0_16 = arith.constant 0 : index
    %19 = vector.load %arg7[%c0_15, %c0_16] : memref<1x8xf32, #tpu.memory_space<vmem>>, vector<1x8xf32>
    %20 = vector.broadcast %19 : vector<1x8xf32> to vector<8x8xf32>
    %21 = arith.addf %18, %20 : vector<8x8xf32>
    %c0_17 = arith.constant 0 : index
    %c0_18 = arith.constant 0 : index
    %22 = vector.load %arg8[%c0_17, %c0_18] : memref<8x8xf32, #tpu.memory_space<vmem>>, vector<8x8xf32>
    tpu.vector_store %arg8[%c0_17, %c0_18], %21 {strides = array<i32>} : memref<8x8xf32, #tpu.memory_space<vmem>>, vector<8x8xf32>,
    return
  }
  func.func @transform_0(%arg0: i32) -> (i32, i32) {
    %c0_i32 = arith.constant 0 : i32
    %c0_i32_0 = arith.constant 0 : i32
    return %arg0, %c0_i32 : i32, i32
  }
  func.func @transform_1(%arg0: i32) -> (i32, i32) {
    %c0_i32 = arith.constant 0 : i32
    %c0_i32_0 = arith.constant 0 : i32
    %c0_i32_1 = arith.constant 0 : i32
    return %c0_i32, %c0_i32_0 : i32, i32
  }
  func.func @transform_2(%arg0: i32) -> (i32, i32) {
    %c0_i32 = arith.constant 0 : i32
    %c0_i32_0 = arith.constant 0 : i32
    %c0_i32_1 = arith.constant 0 : i32
    return %c0_i32, %c0_i32_0 : i32, i32
  }
  func.func @transform_3(%arg0: i32) -> (i32, i32) {
    %c0_i32 = arith.constant 0 : i32
    %c0_i32_0 = arith.constant 0 : i32
    %c0_i32_1 = arith.constant 0 : i32
    return %c0_i32, %c0_i32_0 : i32, i32
  }
  func.func @transform_4(%arg0: i32) -> (i32, i32) {
    %c0_i32 = arith.constant 0 : i32
    %c0_i32_0 = arith.constant 0 : i32
    %c0_i32_1 = arith.constant 0 : i32
    return %c0_i32, %c0_i32_0 : i32, i32
  }
  func.func @transform_5(%arg0: i32) -> (i32, i32) {
    %c0_i32 = arith.constant 0 : i32
    %c0_i32_0 = arith.constant 0 : i32
    %c0_i32_1 = arith.constant 0 : i32
    return %c0_i32, %c0_i32_0 : i32, i32
  }
  func.func @transform_6(%arg0: i32) -> (i32, i32) {
    %c0_i32 = arith.constant 0 : i32
    %c0_i32_0 = arith.constant 0 : i32
    %c0_i32_1 = arith.constant 0 : i32
    return %c0_i32, %c0_i32_0 : i32, i32
  }
  func.func @transform_7(%arg0: i32) -> (i32, i32) {
    %c0_i32 = arith.constant 0 : i32
    %c0_i32_0 = arith.constant 0 : i32
    return %arg0, %c0_i32 : i32, i32
  }
}

</mosaic_0001>

<bundles_post_ra>
// kernel: passenger_behavior_forward.1
= control target key start
LH: loop header
LB: loop body
LE: loop exit
PB: predicated region body
PF: predicated region fallthrough
CT: control target
= control target key end

     0   :  { %12 = vsyncpa [#allocation3], 0  ;;  %s679_s0 = inlined_call_operand.vmem [shape: bf16[8,64], index: 0, kind: input, shape index: {}]   ;;  %s680_s1 = inlined_call_operand.vmem [shape: bf16[64,128], index: 1, kind: input, shape index: {}]   ;;  %s681_s2 = inlined_call_operand.vmem [shape: f32[1,128], index: 2, kind: input, shape index: {}]   ;;  %s682_s3 = inlined_call_operand.vmem [shape: bf16[128,128], index: 3, kind: input, shape index: {}]   ;;  %s683_s4 = inlined_call_operand.vmem [shape: f32[1,128], index: 4, kind: input, shape index: {}]   ;;  %s684_s5 = inlined_call_operand.vmem [shape: bf16[128,8], index: 5, kind: input, shape index: {}]   ;;  %s685_s6 = inlined_call_operand.hbm [shape: f32[1,8], index: 6, kind: input, shape index: {}]   ;;  %s686_s7 = inlined_call_operand.hbm [shape: f32[8,8], index: 7, kind: output, shape index: {}]  }
   0x1   :  { %13 = vsyncpa [#allocation4], 0  ;;  %s534_s24 = smov [#allocation2]  }
   0x2   :  { %s32_s25 = sshll.u32 %s534_s24, 4  ;;  %s33_s25 = int_to_ptr.vmem [resolvable:$true] %s32_s25 }
   0x3   :  { %s498_s26 = scalar_lea.vmem %s33_s25, 16  ;;  %s502_s27 = scalar_lea.vmem %s33_s25, 32 }
   0x4   :  { %p499_p0 = scmp.ne.s32.totalorder %s33_s25, %s498_s26  ;;  %p503_p1 = scmp.lt.s32.totalorder %s33_s25, %s33_s25 }
   0x5   :  { %p504_p2 = scmp.lt.s32.totalorder %s502_s27, %s498_s26 }
   0x7   :  { %p505_p3 = por %p504_p2, %p503_p1 }
   0x9   :  { %p506_p4 = pnand %p505_p3, %p499_p0 }
   0xb   :  { %509 = shalt.err (!%p506_p4)
}
   0xc   :  { %35 = dma.hbm_to_vmem [thread:$0]  %s685_s6, 16, %s33_s25, [#allocation3]  }
   0xd   :  { %530 = dma.done.wait [#allocation3], 16  }
   0xe   :  { %531 = vsyncadd [#allocation3], 4294967280  ;;  %v535_v0 = vmov 0.0   ;;  %vm536_vm0 = vmmov 0   ;;  %v470_v1 = vld [vmem:[%s680_s1 + $0x18] sm:$0xff]   ;;  %v471_v2 = vld [vmem:[%s680_s1 + $0x10] sm:$0xff]  }
   0xf   :  { %414 = vmatprep.subr.bf16.mxu0 %v535_v0  ;;  %422 = vmatprep.mubr.msk.bf16.mxu0 %vm536_vm0, %v535_v0  ;;  %v474_v3 = vld [vmem:[%s682_s3 + $0x38] sm:$0xff]   ;;  %v472_v4 = vld [vmem:[%s680_s1 + $0x8] sm:$0xff]   ;;  %v475_v5 = vld [vmem:[%s682_s3 + $0x30] sm:$0xff]   ;;  %vm80_vm1 = vcmask 523264   ;;  %vm350_vm2 = vcmask 64512  }
  0x10   :  { %426 = vmatprep.subr.bf16.mxu1 %v535_v0  ;;  %442 = vmatprep.mubr.msk.bf16.mxu1 %vm536_vm0, %v535_v0  ;;  %v473_v6 = vld [vmem:[%s680_s1] sm:$0xff]   ;;  %v476_v7 = vld [vmem:[%s682_s3 + $0x28] sm:$0xff]   ;;  %v478_v10 = vld [vmem:[%s682_s3 + $0x18] sm:$0xff]   ;;  %s537_s1 = smov [#allocation5]  }
  0x11   :  { %415 = vmatpush3.bf16.msra.mxu0 %v470_v1  ;;  %427 = vmatpush3.bf16.msra.mxu1 %v474_v3  ;;  %v40_v8 = vld [vmem:[%s679_s0] sm:$0xf]  ;;  %v479_v11 = vld [vmem:[%s682_s3 + $0x10] sm:$0xff]   ;;  %v480_v12 = vld [vmem:[%s682_s3 + $0x8] sm:$0xff]   ;;  %s358_s24 = sshll.u32 %s537_s1, 4  ;;  %s359_s24 = int_to_ptr.vmem [resolvable:$true] %s358_s24 }
  0x12   :  { %416 = vmatprep.subr.bf16.mxu0 %v535_v0  ;;  %428 = vmatprep.subr.bf16.mxu1 %v535_v0  ;;  %v477_v9 = vld [vmem:[%s682_s3 + $0x20] sm:$0xff]   ;;  %v482_v14 = vld [vmem:[%s684_s5 + $0x38] sm:$0xff]   ;;  %v483_v15 = vld [vmem:[%s684_s5 + $0x30] sm:$0xff]   ;;  %p515_p6 = scmp.lt.s32.totalorder %s359_s24, %s359_s24 }
  0x13   :  { %v481_v13 = vld [vmem:[%s682_s3] sm:$0xff]   ;;  %v484_v16 = vld [vmem:[%s684_s5 + $0x28] sm:$0xff]   ;;  %v486_v18 = vld [vmem:[%s684_s5 + $0x18] sm:$0xff]  }
  0x14   :  { %v485_v17 = vld [vmem:[%s684_s5 + $0x20] sm:$0xff]   ;;  %v487_v19 = vld [vmem:[%s684_s5 + $0x10] sm:$0xff]   ;;  %v488_v28 = vld [vmem:[%s684_s5 + $0x8] sm:$0xff]  }
  0x15   :  { %417 = vmatpush3.bf16.msra.mxu0 %v471_v2  ;;  %429 = vmatpush3.bf16.msra.mxu1 %v475_v5  ;;  %v367_v20 = vld [vmem:[%s681_s2] ss:$0 sm:$0xff] }
  0x16   :  { %418 = vmatprep.subr.bf16.mxu0 %v535_v0  ;;  %430 = vmatprep.subr.bf16.mxu1 %v535_v0  ;;  %v489_v29 = vld [vmem:[%s684_s5] sm:$0xff]   ;;  %s510_s5 = scalar_lea.vmem %s359_s24, 128 }
  0x17   :  { %v373_v30 = vld [vmem:[%s683_s4] ss:$0 sm:$0xff]  ;;  %p511_p5 = scmp.ne.s32.totalorder %s359_s24, %s510_s5  ;;  %p516_p7 = scmp.lt.s32.totalorder %s510_s5, %s510_s5 }
  0x18   :  { %v382_v38 = vld [vmem:[#allocation2] ss:$0 sm:$0xff] }
  0x19   :  { %419 = vmatpush3.bf16.msra.mxu0 %v472_v4  ;;  %431 = vmatpush3.bf16.msra.mxu1 %v476_v7  ;;  %p517_p8 = por %p516_p7, %p515_p6 }
  0x1a   :  { %420 = vmatprep.subr.bf16.mxu0 %v535_v0  ;;  %432 = vmatprep.subr.bf16.mxu1 %v535_v0 }
  0x1b   :  { %p518_p9 = pnand %p517_p8, %p511_p5 }
  0x1d   :  { %421 = vmatpush3.bf16.msra.mxu0 %v473_v6  ;;  %433 = vmatpush3.bf16.msra.mxu1 %v477_v9 }
  0x1e   :  { %446 = vmatprep.subr.bf16.mxu0 %v535_v0  ;;  %434 = vmatprep.subr.bf16.mxu1 %v535_v0 }
  0x20   :  { %423 = vmatmul.mubr.msk.bf16.vlgmr.msra.gmra.mxu0 %vm80_vm1, %v40_v8 }
  0x21   :  { %462 = vmatprep.mubr.msk.bf16.mxu0 %vm536_vm0, %v535_v0  ;;  %435 = vmatpush3.bf16.msra.mxu1 %v478_v10 }
  0x22   :  { %436 = vmatprep.subr.bf16.mxu1 %v535_v0  ;;  %447 = vmatpush3.bf16.msra.mxu0 %v482_v14 }
  0x23   :  { %448 = vmatprep.subr.bf16.mxu0 %v535_v0 }
  0x25   :  { %437 = vmatpush3.bf16.msra.mxu1 %v479_v11 }
  0x26   :  { %438 = vmatprep.subr.bf16.mxu1 %v535_v0  ;;  %449 = vmatpush3.bf16.msra.mxu0 %v483_v15 }
  0x27   :  { %450 = vmatprep.subr.bf16.mxu0 %v535_v0 }
  0x29   :  { %439 = vmatpush3.bf16.msra.mxu1 %v480_v12 }
  0x2a   :  { %440 = vmatprep.subr.bf16.mxu1 %v535_v0  ;;  %451 = vmatpush3.bf16.msra.mxu0 %v484_v16 }
  0x2b   :  { %452 = vmatprep.subr.bf16.mxu0 %v535_v0 }
  0x2d   :  { %441 = vmatpush3.bf16.msra.mxu1 %v481_v13 }
  0x2e   :  { %453 = vmatpush3.bf16.msra.mxu0 %v485_v17 }
  0x2f   :  { %454 = vmatprep.subr.bf16.mxu0 %v535_v0 }
  0x32   :  { %455 = vmatpush3.bf16.msra.mxu0 %v486_v18 }
  0x33   :  { %456 = vmatprep.subr.bf16.mxu0 %v535_v0 }
  0x36   :  { %457 = vmatpush3.bf16.msra.mxu0 %v487_v19 }
  0x37   :  { %458 = vmatprep.subr.bf16.mxu0 %v535_v0 }
  0x3a   :  { %459 = vmatpush3.bf16.msra.mxu0 %v488_v28 }
  0x3b   :  { %460 = vmatprep.subr.bf16.mxu0 %v535_v0 }
  0x3e   :  { %461 = vmatpush3.bf16.msra.mxu0 %v489_v29 }
  0xe0   :  { %v118_v21 = vpop.f32.mrf.mxu0 }
  0xe1   :  { %v119_v22 = vadd.f32 %v367_v20, %v118_v21 }
  0xe2   :  { %v424_v23 = vpop.f32.mrf.mxu0 }
  0xe3   :  { %v124_v24 = vmax.f32 %v119_v22, 0.0 }
  0xe4   :  { %v121_v25 = vpop.f32.mrf.mxu0 }
  0xe5   :  { %v125_v26 = vpack.c.bf16 %v124_v24, %v124_v24 }
  0xe6   :  { %v425_v27 = vpop.f32.mrf.mxu0 }
  0xe7   :  { %443 = vmatmul.mubr.bf16.vlgmr.msra.gmra.mxu1 %v125_v26 }
 0x1a7   :  { %v231_v31 = vpop.f32.mrf.mxu1 }
 0x1a8   :  { %v232_v32 = vadd.f32 %v373_v30, %v231_v31 }
 0x1a9   :  { %v444_v33 = vpop.f32.mrf.mxu1 }
 0x1aa   :  { %v237_v34 = vmax.f32 %v232_v32, 0.0 }
 0x1ab   :  { %v234_v35 = vpop.f32.mrf.mxu1 }
 0x1ac   :  { %v238_v36 = vpack.c.bf16 %v237_v34, %v237_v34 }
 0x1ad   :  { %v445_v37 = vpop.f32.mrf.mxu1 }
 0x1ae   :  { %463 = vmatmul.mubr.bf16.vlgmr.msra.gmra.mxu0 %v238_v36 }
 0x26e   :  { %v344_v39 = vpop.f32.mrf.mxu0 }
 0x26f   :  { %v345_v40 = vadd.f32 %v382_v38, %v344_v39 }
 0x270   :  { %v464_v41 = vpop.f32.mrf.mxu0 }
 0x271   :  { %351 = vst.msk [vmem:[#allocation5] sm:$0xff] %vm350_vm2, %v345_v40 }
 0x272   :  { %v347_v42 = vpop.f32.mrf.mxu0 }
 0x273   :  { %521 = shalt.err (!%p518_p9)
}
 0x274   :  { %361 = dma.vmem_to_hbm [thread:$0]  %s359_s24, 128, %s686_s7, [#allocation4]   ;;  %v465_v43 = vpop.f32.mrf.mxu0 }
 0x275   :  { %532 = dma.done.wait [#allocation4], 128  }
 0x276   :  { %533 = vsyncadd [#allocation4], 4294967168 }
 0x277   :  { %365 = vsyncpa [#allocation3], 1 }
 0x278   :  { %366 = vsyncpa [#allocation4], 1 }

</bundles_post_ra>
